<compile_context>
chip_gen: v5e
topology: v5e:2x2
jax: 0.10.0
libtpu: 0.0.40
codegen_flags: <defaults>
</compile_context>

<pallas_src>
import functools

import jax
import jax.numpy as jnp
from jax.experimental import pallas as pl
from jax.experimental.pallas import tpu as pltpu


def _write_head_kernel(emb_ref, fcw_ref, fcb_ref, mem_ref, wprev_ref,
                       w_out_ref, mem_out_ref, *, mem_width, n_reads, gamma):
    emb = emb_ref[...][:, 0, :]                                   # (bB, C)

    # fc_write on the MXU. fc_w / fc_b are zero-padded to a lane-dense width
    # (128), so `o` is a full-lane slab; padded lanes are free on the MXU.
    o = jnp.dot(emb, fcw_ref[...],
                preferred_element_type=jnp.float32,
                precision=jax.lax.Precision.HIGHEST) + fcb_ref[...]   # (bB, 128)

    # _split_cols(o, [M, 1, 1]) -- static lane slices of one slab.
    k = o[:, :mem_width]                                          # (bB, M)
    beta = o[:, mem_width:mem_width + 1]                          # (bB, 1)
    g = o[:, mem_width + 1:mem_width + 2]                         # (bB, 1)

    # F.softplus (default threshold=20) and sigmoid.
    beta = jnp.where(beta > 20.0, beta, jnp.log1p(jnp.exp(beta)))
    g = jax.nn.sigmoid(g)

    mem = mem_ref[...]                                            # (bB, N, M)

    # Cosine similarity between key k and every memory row.
    # NOTE: at large N*M the numerator could move to the MXU via a batched
    # einsum; at these shapes the VPU multiply + XLU lane-reduce is neutral.
    kq = k + 1e-16
    memq = mem + 1e-16
    dot = jnp.sum(memq * kq[:, None, :], axis=-1)                 # (bB, N)
    mem_norm = jnp.sqrt(jnp.sum(memq * memq, axis=-1))            # (bB, N)
    k_norm = jnp.sqrt(jnp.sum(kq * kq, axis=-1, keepdims=True))   # (bB, 1)
    eps = 1e-8
    cos = dot / (jnp.maximum(mem_norm, eps) * jnp.maximum(k_norm, eps))

    # Content-based read weights: softmax(beta * cos) over the N slots.
    scores = beta * cos
    scores = scores - jnp.max(scores, axis=-1, keepdims=True)
    e = jnp.exp(scores)
    w_r = e / jnp.sum(e, axis=-1, keepdims=True)                  # (bB, N)

    wprev = wprev_ref[...]                                        # (bB, 3, N)
    w_u_prev = wprev[:, 0, :]
    w_r_prev = wprev[:, 1, :]
    w_lu_prev = wprev[:, 2, :]

    # LRUA write weights and usage weights.
    w_w = g * w_r_prev + (1.0 - g) * w_lu_prev                    # (bB, N)
    w_u = gamma * w_u_prev + w_r + w_w                            # (bB, N)

    # Least-used weights: 1 for the n_reads smallest usage entries.
    # Threshold search: find v = n_reads-th smallest (with multiplicity) in
    # O(N * n_reads) VPU/XLU work, then w_lu = (w_u <= v).  Exactly matches
    # the previous strict-less rank-by-count formulation.
    # TODO(synk): exact torch.topk index tie-breaking for tied w_u values is
    # not reproduced (same caveat as before).
    big = jnp.float32(3.0e38)
    nr = jnp.float32(n_reads)
    thresh = jnp.min(w_u, axis=-1, keepdims=True)                 # (bB, 1)
    count = jnp.sum((w_u <= thresh).astype(jnp.float32), axis=-1, keepdims=True)
    done = count >= nr
    for _ in range(n_reads - 1):
        nxt = jnp.min(jnp.where(w_u > thresh, w_u, big), axis=-1, keepdims=True)
        thresh = jnp.where(done, thresh, nxt)
        count = jnp.sum((w_u <= thresh).astype(jnp.float32), axis=-1,
                        keepdims=True)
        done = count >= nr
    w_lu = (w_u <= thresh).astype(jnp.float32)                    # (bB, N)

    # memory.lrua_write(w_w, k): M_t = M_{t-1} + w_w (outer) k
    # (output block is HBM-aliased with the memory input -> in-place write).
    mem_out_ref[...] = mem + w_w[:, :, None] * k[:, None, :]

    # torch.cat((w_u, w_r, w_lu), dim=1).view(B, 3, N): direct sublane-offset
    # stores, no concatenated temporary.
    w_out_ref[:, 0:1, :] = w_u[:, None, :]
    w_out_ref[:, 1:2, :] = w_r[:, None, :]
    w_out_ref[:, 2:3, :] = w_lu[:, None, :]


def _pick_batch_block(B, N, M, C, kout, vmem_budget_bytes=8 << 20):
    """Batch rows per grid step, sized for double-buffered VMEM residency.

    Budget is kept well under the scoped VMEM default on all generations
    (incl. v7x's 64 MiB physical / 32 MiB scoped), and we keep >=2 grid steps
    whenever B >= 2 so v7x can shard the batch across its 2 TensorCores.
    """
    row_bytes = 4 * (C + 2 * N * M + 2 * 3 * N + kout)   # f32 in+out per row
    bb = max(1, vmem_budget_bytes // (2 * row_bytes))    # 2x double-buffering
    bb = min(bb, max(1, B // 2))
    bb = min(bb, B)
    while B % bb:
        bb -= 1
    return bb


@functools.partial(jax.jit, static_argnums=(5, 6))
def ntm_write_head_forward(embeddings, w_prev, memory, fc_w, fc_b,
                           n_reads, gamma=0.95):
    """Pallas implementation of NTMWriteHead.forward.

    Returns (w, memory_out): the new head state (B,3,N) and the written memory
    (HBM-aliased with the `memory` input inside the pallas_call; donate
    `memory` at the outer jit boundary to get fully in-place behaviour).
    """
    B, C = embeddings.shape
    _, N, M = memory.shape
    assert fc_w.shape == (C, M + 2)
    assert fc_b.shape[-1] == M + 2
    assert w_prev.shape == (B, 3, N)

    # Pad the fc output dimension up to a lane-dense multiple of 128.
    kout = max(128, ((M + 2 + 127) // 128) * 128)
    fcw_p = jnp.zeros((C, kout), jnp.float32).at[:, :M + 2].set(
        fc_w.astype(jnp.float32))
    fcb_p = jnp.zeros((1, kout), jnp.float32).at[:, :M + 2].set(
        fc_b.reshape(1, M + 2).astype(jnp.float32))

    emb3 = embeddings.astype(jnp.float32).reshape(B, 1, C)

    bB = _pick_batch_block(B, N, M, C, kout)
    grid = (B // bB,)

    kernel = functools.partial(_write_head_kernel, mem_width=M,
                               n_reads=n_reads, gamma=gamma)

    w, mem_out = pl.pallas_call(
        kernel,
        out_shape=(jax.ShapeDtypeStruct((B, 3, N), jnp.float32),
                   jax.ShapeDtypeStruct((B, N, M), jnp.float32)),
        grid_spec=pltpu.PrefetchScalarGridSpec(
            num_scalar_prefetch=0,
            grid=grid,
            in_specs=[
                pl.BlockSpec((bB, 1, C), lambda i: (i, 0, 0)),      # embeddings
                pl.BlockSpec((C, kout), lambda i: (0, 0)),          # fc_w (shared)
                pl.BlockSpec((1, kout), lambda i: (0, 0)),          # fc_b (shared)
                pl.BlockSpec((bB, N, M), lambda i: (i, 0, 0)),      # memory
                pl.BlockSpec((bB, 3, N), lambda i: (i, 0, 0)),      # w_prev
            ],
            out_specs=(
                pl.BlockSpec((bB, 3, N), lambda i: (i, 0, 0)),      # w
                pl.BlockSpec((bB, N, M), lambda i: (i, 0, 0)),      # memory_out
            ),
        ),
        # In-place LRUA write: memory (input index 3) aliases memory_out
        # (output index 1) -> no extra (B,N,M) HBM allocation/copy.
        input_output_aliases={3: 1},
        compiler_params=pltpu.CompilerParams(
            dimension_semantics=("parallel",)),
    )(emb3, fcw_p, fcb_p, memory, w_prev)
    return w, mem_out


if __name__ == "__main__":
    # Small shapes consistent with the module:
    #   batch B=2, controller_size C=32, memory N=16 slots of width M=16.
    B, C, N, M = 2, 32, 16, 16
    n_reads = 4

    key = jax.random.PRNGKey(0)
    k1, k2, k3, k4 = jax.random.split(key, 4)

    # nn.Linear(controller_size, M+2): xavier_uniform(gain=1.4), bias ~ N(0, 0.01)
    fan_in, fan_out = C, M + 2
    bound = 1.4 * (6.0 / (fan_in + fan_out)) ** 0.5
    fc_w = jax.random.uniform(k1, (C, M + 2), jnp.float32, -bound, bound)
    fc_b = (0.01 * jax.random.normal(k2, (1, M + 2))).astype(jnp.float32)

    embeddings = jax.random.normal(k3, (B, C), dtype=jnp.float32)
    memory = 0.05 * jax.random.normal(k4, (B, N, M), dtype=jnp.float32)
    w_prev = jnp.zeros((B, 3, N), jnp.float32)  # create_new_state(batch_size)

    w, mem_out = ntm_write_head_forward(embeddings, w_prev, memory,
                                        fc_w, fc_b, n_reads, 0.95)
    jax.block_until_ready((w, mem_out))

    assert w.shape == (B, 3, N) and mem_out.shape == (B, N, M)
    print("KERNEL_OK")
</pallas_src>

<mosaic_0001>
module attributes {stable_mosaic.version = 11 : i64} {
  func.func @_write_head_kernel(%arg0: i32, %arg1: memref<1x1x32xf32, #tpu.memory_space<vmem>>, %arg2: memref<32x128xf32, #tpu.memory_space<vmem>>, %arg3: memref<1x128xf32, #tpu.memory_space<vmem>>, %arg4: memref<1x16x16xf32, #tpu.memory_space<vmem>>, %arg5: memref<1x3x16xf32, #tpu.memory_space<vmem>>, %arg6: memref<1x3x16xf32, #tpu.memory_space<vmem>>, %arg7: memref<1x16x16xf32, #tpu.memory_space<vmem>>) attributes {dimension_semantics = [#tpu.dimension_semantics<parallel>], iteration_bounds = array<i64: 2>, scalar_prefetch = 0 : i64, scratch_operands = 0 : i64, tpu.core_type = #tpu.core_type<tc>, window_params = [{transform_indices = @transform_0, window_bounds = array<i64: 1, 1, 32>}, {pipeline_mode = #tpu.pipeline_mode<synchronous>, transform_indices = @transform_1, window_bounds = array<i64: 32, 128>}, {pipeline_mode = #tpu.pipeline_mode<synchronous>, transform_indices = @transform_2, window_bounds = array<i64: 1, 128>}, {transform_indices = @transform_3, window_bounds = array<i64: 1, 16, 16>}, {transform_indices = @transform_4, window_bounds = array<i64: 1, 3, 16>}, {transform_indices = @transform_5, window_bounds = array<i64: 1, 3, 16>}, {transform_indices = @transform_6, window_bounds = array<i64: 1, 16, 16>}]} {
    %c0 = arith.constant 0 : index
    %c0_0 = arith.constant 0 : index
    %c0_1 = arith.constant 0 : index
    %0 = vector.load %arg1[%c0, %c0_0, %c0_1] : memref<1x1x32xf32, #tpu.memory_space<vmem>>, vector<1x1x32xf32>
    %1 = vector.shape_cast %0 : vector<1x1x32xf32> to vector<1x32xf32>
    %c0_2 = arith.constant 0 : index
    %c0_3 = arith.constant 0 : index
    %2 = vector.load %arg2[%c0_2, %c0_3] : memref<32x128xf32, #tpu.memory_space<vmem>>, vector<32x128xf32>
    %cst = arith.constant dense<0.000000e+00> : vector<1x128xf32>
    %3 = tpu.matmul %1, %2, %cst {dimension_numbers = #tpu.dot_dimension_numbers<[1], [0], [0], [1], [0, 0, 1, 1], [], []>, precision = #tpu.contract_precision<fp32>} : vector<1x32xf32>, vector<32x128xf32>, vector<1x128xf32> -> vector<1x128xf32>
    %c0_4 = arith.constant 0 : index
    %c0_5 = arith.constant 0 : index
    %4 = vector.load %arg3[%c0_4, %c0_5] : memref<1x128xf32, #tpu.memory_space<vmem>>, vector<1x128xf32>
    %5 = arith.addf %3, %4 : vector<1x128xf32>
    %6 = vector.extract_strided_slice %5 {offsets = [0, 0], sizes = [1, 16], strides = [1, 1]} : vector<1x128xf32> to vector<1x16xf32>
    %7 = vector.extract_strided_slice %5 {offsets = [0, 16], sizes = [1, 1], strides = [1, 1]} : vector<1x128xf32> to vector<1x1xf32>
    %8 = vector.extract_strided_slice %5 {offsets = [0, 17], sizes = [1, 1], strides = [1, 1]} : vector<1x128xf32> to vector<1x1xf32>
    %cst_6 = arith.constant 2.000000e+01 : f32
    %9 = vector.broadcast %cst_6 : f32 to vector<1x1xf32>
    %10 = arith.cmpf ogt, %7, %9 : vector<1x1xf32>
    %11 = math.exp %7 : vector<1x1xf32>
    %12 = math.log1p %11 : vector<1x1xf32>
    %13 = arith.select %10, %7, %12 : vector<1x1xi1>, vector<1x1xf32>
    %14 = arith.negf %8 : vector<1x1xf32>
    %15 = math.exp %14 : vector<1x1xf32>
    %cst_7 = arith.constant 1.000000e+00 : f32
    %16 = vector.broadcast %cst_7 : f32 to vector<1x1xf32>
    %17 = arith.addf %16, %15 : vector<1x1xf32>
    %18 = arith.divf %16, %17 : vector<1x1xf32>
    %c0_8 = arith.constant 0 : index
    %c0_9 = arith.constant 0 : index
    %c0_10 = arith.constant 0 : index
    %19 = vector.load %arg4[%c0_8, %c0_9, %c0_10] : memref<1x16x16xf32, #tpu.memory_space<vmem>>, vector<1x16x16xf32>
    %cst_11 = arith.constant 1.000000e-16 : f32
    %20 = vector.broadcast %cst_11 : f32 to vector<1x16xf32>
    %21 = arith.addf %6, %20 : vector<1x16xf32>
    %cst_12 = arith.constant 1.000000e-16 : f32
    %22 = vector.broadcast %cst_12 : f32 to vector<1x16x16xf32>
    %23 = arith.addf %19, %22 : vector<1x16x16xf32>
    %24 = vector.shape_cast %21 : vector<1x16xf32> to vector<1x1x16xf32>
    %25 = vector.broadcast %24 : vector<1x1x16xf32> to vector<1x16x16xf32>
    %26 = arith.mulf %23, %25 : vector<1x16x16xf32>
    %cst_13 = arith.constant dense<0.000000e+00> : vector<1x16xf32>
    %27 = vector.multi_reduction <add>, %26, %cst_13 [2] : vector<1x16x16xf32> to vector<1x16xf32>
    %28 = arith.mulf %23, %23 : vector<1x16x16xf32>
    %cst_14 = arith.constant dense<0.000000e+00> : vector<1x16xf32>
    %29 = vector.multi_reduction <add>, %28, %cst_14 [2] : vector<1x16x16xf32> to vector<1x16xf32>
    %30 = math.sqrt %29 : vector<1x16xf32>
    %31 = arith.mulf %21, %21 : vector<1x16xf32>
    %cst_15 = arith.constant dense<0.000000e+00> : vector<1xf32>
    %32 = vector.multi_reduction <add>, %31, %cst_15 [1] : vector<1x16xf32> to vector<1xf32>
    %33 = vector.shape_cast %32 : vector<1xf32> to vector<1x1xf32>
    %34 = math.sqrt %33 : vector<1x1xf32>
    %cst_16 = arith.constant 9.99999993E-9 : f32
    %35 = vector.broadcast %cst_16 : f32 to vector<1x16xf32>
    %36 = arith.maximumf %30, %35 : vector<1x16xf32>
    %cst_17 = arith.constant 9.99999993E-9 : f32
    %37 = vector.broadcast %cst_17 : f32 to vector<1x1xf32>
    %38 = arith.maximumf %34, %37 : vector<1x1xf32>
    %39 = vector.broadcast %38 : vector<1x1xf32> to vector<1x16xf32>
    %40 = arith.mulf %36, %39 : vector<1x16xf32>
    %41 = arith.divf %27, %40 : vector<1x16xf32>
    %42 = vector.broadcast %13 : vector<1x1xf32> to vector<1x16xf32>
    %43 = arith.mulf %42, %41 : vector<1x16xf32>
    %cst_18 = arith.constant dense<0xFF800000> : vector<1xf32>
    %44 = vector.multi_reduction <maximumf>, %43, %cst_18 [1] : vector<1x16xf32> to vector<1xf32>
    %45 = vector.shape_cast %44 : vector<1xf32> to vector<1x1xf32>
    %46 = vector.broadcast %45 : vector<1x1xf32> to vector<1x16xf32>
    %47 = arith.subf %43, %46 : vector<1x16xf32>
    %48 = math.exp %47 : vector<1x16xf32>
    %cst_19 = arith.constant dense<0.000000e+00> : vector<1xf32>
    %49 = vector.multi_reduction <add>, %48, %cst_19 [1] : vector<1x16xf32> to vector<1xf32>
    %50 = vector.shape_cast %49 : vector<1xf32> to vector<1x1xf32>
    %51 = vector.broadcast %50 : vector<1x1xf32> to vector<1x16xf32>
    %52 = arith.divf %48, %51 : vector<1x16xf32>
    %c0_20 = arith.constant 0 : index
    %c0_21 = arith.constant 0 : index
    %c0_22 = arith.constant 0 : index
    %53 = vector.load %arg5[%c0_20, %c0_21, %c0_22] : memref<1x3x16xf32, #tpu.memory_space<vmem>>, vector<1x3x16xf32>
    %54 = vector.extract_strided_slice %53 {offsets = [0, 0, 0], sizes = [1, 1, 16], strides = [1, 1, 1]} : vector<1x3x16xf32> to vector<1x1x16xf32>
    %55 = vector.shape_cast %54 : vector<1x1x16xf32> to vector<1x16xf32>
    %56 = vector.extract_strided_slice %53 {offsets = [0, 1, 0], sizes = [1, 1, 16], strides = [1, 1, 1]} : vector<1x3x16xf32> to vector<1x1x16xf32>
    %57 = vector.shape_cast %56 : vector<1x1x16xf32> to vector<1x16xf32>
    %58 = vector.extract_strided_slice %53 {offsets = [0, 2, 0], sizes = [1, 1, 16], strides = [1, 1, 1]} : vector<1x3x16xf32> to vector<1x1x16xf32>
    %59 = vector.shape_cast %58 : vector<1x1x16xf32> to vector<1x16xf32>
    %60 = vector.broadcast %18 : vector<1x1xf32> to vector<1x16xf32>
    %61 = arith.mulf %60, %57 : vector<1x16xf32>
    %cst_23 = arith.constant 1.000000e+00 : f32
    %62 = vector.broadcast %cst_23 : f32 to vector<1x1xf32>
    %63 = arith.subf %62, %18 : vector<1x1xf32>
    %64 = vector.broadcast %63 : vector<1x1xf32> to vector<1x16xf32>
    %65 = arith.mulf %64, %59 : vector<1x16xf32>
    %66 = arith.addf %61, %65 : vector<1x16xf32>
    %cst_24 = arith.constant 0.949999988 : f32
    %67 = vector.broadcast %cst_24 : f32 to vector<1x16xf32>
    %68 = arith.mulf %67, %55 : vector<1x16xf32>
    %69 = arith.addf %68, %52 : vector<1x16xf32>
    %70 = arith.addf %69, %66 : vector<1x16xf32>
    %cst_25 = arith.constant dense<0x7F800000> : vector<1xf32>
    %71 = vector.multi_reduction <minimumf>, %70, %cst_25 [1] : vector<1x16xf32> to vector<1xf32>
    %72 = vector.shape_cast %71 : vector<1xf32> to vector<1x1xf32>
    %73 = vector.broadcast %72 : vector<1x1xf32> to vector<1x16xf32>
    %74 = arith.cmpf ole, %70, %73 : vector<1x16xf32>
    %75 = arith.extui %74 : vector<1x16xi1> to vector<1x16xi32>
    %76 = arith.sitofp %75 : vector<1x16xi32> to vector<1x16xf32>
    %cst_26 = arith.constant dense<0.000000e+00> : vector<1xf32>
    %77 = vector.multi_reduction <add>, %76, %cst_26 [1] : vector<1x16xf32> to vector<1xf32>
    %78 = vector.shape_cast %77 : vector<1xf32> to vector<1x1xf32>
    %cst_27 = arith.constant 4.000000e+00 : f32
    %79 = vector.broadcast %cst_27 : f32 to vector<1x1xf32>
    %80 = arith.cmpf oge, %78, %79 : vector<1x1xf32>
    %81 = vector.broadcast %72 : vector<1x1xf32> to vector<1x16xf32>
    %82 = arith.cmpf ogt, %70, %81 : vector<1x16xf32>
    %cst_28 = arith.constant 3.000000e+38 : f32
    %83 = vector.broadcast %cst_28 : f32 to vector<1x16xf32>
    %84 = arith.select %82, %70, %83 : vector<1x16xi1>, vector<1x16xf32>
    %cst_29 = arith.constant dense<0x7F800000> : vector<1xf32>
    %85 = vector.multi_reduction <minimumf>, %84, %cst_29 [1] : vector<1x16xf32> to vector<1xf32>
    %86 = vector.shape_cast %85 : vector<1xf32> to vector<1x1xf32>
    %87 = arith.select %80, %72, %86 : vector<1x1xi1>, vector<1x1xf32>
    %88 = vector.broadcast %87 : vector<1x1xf32> to vector<1x16xf32>
    %89 = arith.cmpf ole, %70, %88 : vector<1x16xf32>
    %90 = arith.extui %89 : vector<1x16xi1> to vector<1x16xi32>
    %91 = arith.sitofp %90 : vector<1x16xi32> to vector<1x16xf32>
    %cst_30 = arith.constant dense<0.000000e+00> : vector<1xf32>
    %92 = vector.multi_reduction <add>, %91, %cst_30 [1] : vector<1x16xf32> to vector<1xf32>
    %93 = vector.shape_cast %92 : vector<1xf32> to vector<1x1xf32>
    %cst_31 = arith.constant 4.000000e+00 : f32
    %94 = vector.broadcast %cst_31 : f32 to vector<1x1xf32>
    %95 = arith.cmpf oge, %93, %94 : vector<1x1xf32>
    %96 = vector.broadcast %87 : vector<1x1xf32> to vector<1x16xf32>
    %97 = arith.cmpf ogt, %70, %96 : vector<1x16xf32>
    %cst_32 = arith.constant 3.000000e+38 : f32
    %98 = vector.broadcast %cst_32 : f32 to vector<1x16xf32>
    %99 = arith.select %97, %70, %98 : vector<1x16xi1>, vector<1x16xf32>
    %cst_33 = arith.constant dense<0x7F800000> : vector<1xf32>
    %100 = vector.multi_reduction <minimumf>, %99, %cst_33 [1] : vector<1x16xf32> to vector<1xf32>
    %101 = vector.shape_cast %100 : vector<1xf32> to vector<1x1xf32>
    %102 = arith.select %95, %87, %101 : vector<1x1xi1>, vector<1x1xf32>
    %103 = vector.broadcast %102 : vector<1x1xf32> to vector<1x16xf32>
    %104 = arith.cmpf ole, %70, %103 : vector<1x16xf32>
    %105 = arith.extui %104 : vector<1x16xi1> to vector<1x16xi32>
    %106 = arith.sitofp %105 : vector<1x16xi32> to vector<1x16xf32>
    %cst_34 = arith.constant dense<0.000000e+00> : vector<1xf32>
    %107 = vector.multi_reduction <add>, %106, %cst_34 [1] : vector<1x16xf32> to vector<1xf32>
    %108 = vector.shape_cast %107 : vector<1xf32> to vector<1x1xf32>
    %cst_35 = arith.constant 4.000000e+00 : f32
    %109 = vector.broadcast %cst_35 : f32 to vector<1x1xf32>
    %110 = arith.cmpf oge, %108, %109 : vector<1x1xf32>
    %111 = vector.broadcast %102 : vector<1x1xf32> to vector<1x16xf32>
    %112 = arith.cmpf ogt, %70, %111 : vector<1x16xf32>
    %cst_36 = arith.constant 3.000000e+38 : f32
    %113 = vector.broadcast %cst_36 : f32 to vector<1x16xf32>
    %114 = arith.select %112, %70, %113 : vector<1x16xi1>, vector<1x16xf32>
    %cst_37 = arith.constant dense<0x7F800000> : vector<1xf32>
    %115 = vector.multi_reduction <minimumf>, %114, %cst_37 [1] : vector<1x16xf32> to vector<1xf32>
    %116 = vector.shape_cast %115 : vector<1xf32> to vector<1x1xf32>
    %117 = arith.select %110, %102, %116 : vector<1x1xi1>, vector<1x1xf32>
    %118 = vector.broadcast %117 : vector<1x1xf32> to vector<1x16xf32>
    %119 = arith.cmpf ole, %70, %118 : vector<1x16xf32>
    %120 = arith.extui %119 : vector<1x16xi1> to vector<1x16xi32>
    %121 = arith.sitofp %120 : vector<1x16xi32> to vector<1x16xf32>
    %122 = vector.shape_cast %66 : vector<1x16xf32> to vector<1x16x1xf32>
    %123 = vector.shape_cast %6 : vector<1x16xf32> to vector<1x1x16xf32>
    %124 = vector.broadcast %122 : vector<1x16x1xf32> to vector<1x16x16xf32>
    %125 = vector.broadcast %123 : vector<1x1x16xf32> to vector<1x16x16xf32>
    %126 = arith.mulf %124, %125 : vector<1x16x16xf32>
    %127 = arith.addf %19, %126 : vector<1x16x16xf32>
    %c0_38 = arith.constant 0 : index
    %c0_39 = arith.constant 0 : index
    %c0_40 = arith.constant 0 : index
    %128 = vector.load %arg7[%c0_38, %c0_39, %c0_40] : memref<1x16x16xf32, #tpu.memory_space<vmem>>, vector<1x16x16xf32>
    tpu.vector_store %arg7[%c0_38, %c0_39, %c0_40], %127 {strides = array<i32>} : memref<1x16x16xf32, #tpu.memory_space<vmem>>, vector<1x16x16xf32>,
    %129 = vector.shape_cast %70 : vector<1x16xf32> to vector<1x1x16xf32>
    %c0_41 = arith.constant 0 : index
    %c0_42 = arith.constant 0 : index
    %c0_43 = arith.constant 0 : index
    %130 = vector.load %arg6[%c0_41, %c0_42, %c0_43] : memref<1x3x16xf32, #tpu.memory_space<vmem>>, vector<1x1x16xf32>
    tpu.vector_store %arg6[%c0_41, %c0_42, %c0_43], %129 {strides = array<i32>} : memref<1x3x16xf32, #tpu.memory_space<vmem>>, vector<1x1x16xf32>,
    %131 = vector.shape_cast %52 : vector<1x16xf32> to vector<1x1x16xf32>
    %c0_44 = arith.constant 0 : index
    %c1 = arith.constant 1 : index
    %c0_45 = arith.constant 0 : index
    %132 = vector.load %arg6[%c0_44, %c1, %c0_45] : memref<1x3x16xf32, #tpu.memory_space<vmem>>, vector<1x1x16xf32>
    tpu.vector_store %arg6[%c0_44, %c1, %c0_45], %131 {strides = array<i32>} : memref<1x3x16xf32, #tpu.memory_space<vmem>>, vector<1x1x16xf32>,
    %133 = vector.shape_cast %121 : vector<1x16xf32> to vector<1x1x16xf32>
    %c0_46 = arith.constant 0 : index
    %c2 = arith.constant 2 : index
    %c0_47 = arith.constant 0 : index
    %134 = vector.load %arg6[%c0_46, %c2, %c0_47] : memref<1x3x16xf32, #tpu.memory_space<vmem>>, vector<1x1x16xf32>
    tpu.vector_store %arg6[%c0_46, %c2, %c0_47], %133 {strides = array<i32>} : memref<1x3x16xf32, #tpu.memory_space<vmem>>, vector<1x1x16xf32>,
    return
  }
  func.func @transform_0(%arg0: i32) -> (i32, i32, i32) {
    %c0_i32 = arith.constant 0 : i32
    %c0_i32_0 = arith.constant 0 : i32
    %c0_i32_1 = arith.constant 0 : i32
    return %arg0, %c0_i32, %c0_i32_0 : i32, i32, i32
  }
  func.func @transform_1(%arg0: i32) -> (i32, i32) {
    %c0_i32 = arith.constant 0 : i32
    %c0_i32_0 = arith.constant 0 : i32
    %c0_i32_1 = arith.constant 0 : i32
    return %c0_i32, %c0_i32_0 : i32, i32
  }
  func.func @transform_2(%arg0: i32) -> (i32, i32) {
    %c0_i32 = arith.constant 0 : i32
    %c0_i32_0 = arith.constant 0 : i32
    %c0_i32_1 = arith.constant 0 : i32
    return %c0_i32, %c0_i32_0 : i32, i32
  }
  func.func @transform_3(%arg0: i32) -> (i32, i32, i32) {
    %c0_i32 = arith.constant 0 : i32
    %c0_i32_0 = arith.constant 0 : i32
    %c0_i32_1 = arith.constant 0 : i32
    return %arg0, %c0_i32, %c0_i32_0 : i32, i32, i32
  }
  func.func @transform_4(%arg0: i32) -> (i32, i32, i32) {
    %c0_i32 = arith.constant 0 : i32
    %c0_i32_0 = arith.constant 0 : i32
    %c0_i32_1 = arith.constant 0 : i32
    return %arg0, %c0_i32, %c0_i32_0 : i32, i32, i32
  }
  func.func @transform_5(%arg0: i32) -> (i32, i32, i32) {
    %c0_i32 = arith.constant 0 : i32
    %c0_i32_0 = arith.constant 0 : i32
    %c0_i32_1 = arith.constant 0 : i32
    return %arg0, %c0_i32, %c0_i32_0 : i32, i32, i32
  }
  func.func @transform_6(%arg0: i32) -> (i32, i32, i32) {
    %c0_i32 = arith.constant 0 : i32
    %c0_i32_0 = arith.constant 0 : i32
    %c0_i32_1 = arith.constant 0 : i32
    return %arg0, %c0_i32, %c0_i32_0 : i32, i32, i32
  }
}

</mosaic_0001>

<bundles_post_ra>
// kernel: ntm_write_head_forward.1
= control target key start
LH: loop header
LB: loop body
LE: loop exit
PB: predicated region body
PF: predicated region fallthrough
CT: control target
= control target key end

     0   :  { %s975_s21 = smov 0   ;;  %s1067_s0 = inlined_call_operand.vmem [shape: f32[2,1,32], index: 0, kind: input, shape index: {}]   ;;  %s1068_s1 = inlined_call_operand.vmem [shape: f32[32,128], index: 1, kind: input, shape index: {}]   ;;  %s1069_s2 = inlined_call_operand.vmem [shape: f32[1,128], index: 2, kind: input, shape index: {}]   ;;  %s1070_s3 = inlined_call_operand.vmem [shape: f32[2,16,16], index: 3, kind: input, shape index: {}, may-alias: {3,6}]   ;;  %s1071_s4 = inlined_call_operand.vmem [shape: f32[2,3,16], index: 4, kind: input, shape index: {}]   ;;  %s1072_s5 = inlined_call_operand.vmem [shape: f32[2,3,16], index: 5, kind: output, shape index: {0}]   ;;  %s1073_s6 = inlined_call_operand.vmem [shape: f32[2,16,16], index: 6, kind: output, shape index: {1}, may-alias: {3,6}]  }
   0x1 LB: > { %s867_s22 = sadd.s32 4294967295, %s934_s21   ;;  %p871_p0 = scmp.ge.s32.totalorder %s934_s21, 1  ;;  %s934_s21 = sphi %s975_s21, %s17_s21  }
   0x2   : > { %p232_p1 = scmp.lt.s32.totalorder %s934_s21, 3 }
   0x4   : > { %p233_p2 = pnand %p871_p0, %p232_p1 }
   0x5   : > { %p273_p3 = scmp.lt.s32.totalorder (!%p233_p2), %s867_s22, 1 }
   0x6   : > { %236 = sbr.rel (%p233_p2) target bundleno = 1228 (0x4cc), region = 40 }
   0xb   : > { %v298_v0 = vld [vmem:[%s1068_s1 + $0x18] sm:$0xff]  ;;  %v297_v1 = vld [vmem:[%s1068_s1 + $0x10] sm:$0xff]  ;;  %v296_v2 = vld [vmem:[%s1068_s1 + $0x8] sm:$0xff]  ;;  %s1075_s22 = smov (!%p273_p3, %s867_s22), 1  ;;  %vm300_vm0 = vcmask 261120   ;;  %vm529_vm1 = vcmask 130048  }
   0xc   : > { %v316_v3 = vand.u32 4294901760, %v298_v0  ;;  %v318_v4 = vand.u32 4294901760, %v297_v1  ;;  %v320_v5 = vand.u32 4294901760, %v296_v2  ;;  %v295_v6 = vld [vmem:[%s1068_s1] sm:$0xff]  ;;  %s275_s9 = scalar_lea.vmem %s1067_s0, %s1075_s22  ;;  %s885_s10 = sshll.u32 %s1075_s22, 4  ;;  %v936_v35 = vmov 16  }
   0xd   : > { %v322_v7 = vand.u32 4294901760, %v295_v6  ;;  %v294_v14 = vld [vmem:[%s275_s9] sm:$0x1]  ;;  %s280_s13 = scalar_lea.vmem %s1070_s3, %s885_s10  ;;  %901 = vset.pattern.permute.xlu1 %v936_v35  ;;  %vm569_vm2 = vcmask 122880   ;;  %s874_s16 = sshll.u32 %s1075_s22, 2 }
   0xe   : > { %v346_v8 = vsub.f32 %v298_v0, %v316_v3  ;;  %317 = vmatpush.msra.mxu0 %v316_v3  ;;  %v352_v9 = vsub.f32 %v297_v1, %v318_v4  ;;  %417 = vmatpush.msra.mxu3 %v316_v3  ;;  %v358_v10 = vsub.f32 %v296_v2, %v320_v5  ;;  %v302_v16 = vsel %vm300_vm0, %v294_v14, 0  ;;  %v1007_v31 = vld [vmem:[%s280_s13 + $0x8] sm:$0xff]  ;;  %v299_v36 = vld [vmem:[%s1069_s2] sm:$0x1]  ;;  %s284_s19 = scalar_lea.vmem %s1071_s4, %s874_s16  ;;  %s1038_s24 = scalar_lea.vmem %s1072_s5, %s874_s16 }
   0xf   : > { %v364_v11 = vsub.f32 %v295_v6, %v322_v7  ;;  %v324_v20 = vand.u32 4294901760, %v302_v16  ;;  %v525_v32 = vadd.f32 1e-16, %v1007_v31  ;;  %v1014_v48 = vld [vmem:[%s280_s13] sm:$0xff]  ;;  %s293_s27 = scalar_lea.vmem %s1073_s6, %s885_s10 }
  0x10   : > { %388 = vmatpush.msra.mxu2 %v346_v8  ;;  %319 = vmatpush.msra.mxu0 %v318_v4  ;;  %v347_v12 = vand.u32 4294901760, %v346_v8  ;;  %v353_v13 = vand.u32 4294901760, %v352_v9  ;;  %v359_v15 = vand.u32 4294901760, %v358_v10  ;;  %v524_v52 = vadd.f32 1e-16, %v1014_v48 }
  0x11   : > { %419 = vmatpush.msra.mxu3 %v318_v4  ;;  %v365_v17 = vand.u32 4294901760, %v364_v11  ;;  %v325_v24 = vsub.f32 %v302_v16, %v324_v20  ;;  %v537_v33 = vmul.f32 %v525_v32, %v525_v32 }
  0x12   : > { %391 = vmatpush.msra.mxu2 %v352_v9  ;;  %v348_v18 = vsub.f32 %v346_v8, %v347_v12  ;;  %321 = vmatpush.msra.mxu0 %v320_v5  ;;  %v354_v19 = vsub.f32 %v352_v9, %v353_v13  ;;  %v360_v21 = vsub.f32 %v358_v10, %v359_v15 }
  0x13   : > { %421 = vmatpush.msra.mxu3 %v320_v5  ;;  %v366_v25 = vsub.f32 %v364_v11, %v365_v17  ;;  %v326_v27 = vand.u32 4294901760, %v325_v24  ;;  %v541_v34 = vsel %vm529_vm1, %v537_v33, 0.0  ;;  %v536_v60 = vmul.f32 %v524_v52, %v524_v52 }
  0x14   : > { %v349_v22 = vand.u32 4294901760, %v348_v18  ;;  %394 = vmatpush.msra.mxu2 %v358_v10  ;;  %v355_v23 = vand.u32 4294901760, %v354_v19  ;;  %323 = vmatpush.msra.mxu0 %v322_v7  ;;  %v361_v26 = vand.u32 4294901760, %v360_v21 }
  0x15   : > { %423 = vmatpush.msra.mxu3 %v322_v7  ;;  %v327_v28 = vsub.f32 %v325_v24, %v326_v27  ;;  %v367_v29 = vand.u32 4294901760, %v366_v25  ;;  %542 = vadd.xlane.f32.xlu1 %v541_v34  ;;  %v538_v62 = vsel %vm529_vm1, %v536_v60, 0.0 }
  0x16   : > { %446 = vmatpush.msrb.mxu0 %v347_v12  ;;  %350 = vmatpush.msra.mxu1 %v349_v22 }
  0x17   : > { %397 = vmatpush.msra.mxu2 %v364_v11  ;;  %427 = vmatmul.f32.vlgmr.msra.gmra.mxu3 %v326_v27  ;;  %v328_v30 = vand.u32 4294901760, %v327_v28 }
  0x18   : > { %400 = vmatmul.f32.vlgmr.msra.gmra.mxu2 %v325_v24  ;;  %450 = vmatpush.msrb.mxu0 %v353_v13  ;;  %v937_v24 = vmov 0  }
  0x19   : > { %356 = vmatpush.msra.mxu1 %v355_v23  ;;  %329 = vmatmul.f32.vlgmr.msra.gmra.mxu0 %v328_v30 }
  0x1a   : > { %454 = vmatpush.msrb.mxu0 %v359_v15  ;;  %900 = vset.pattern.permute.xlu0 %v937_v24 }
  0x1b   : > { %362 = vmatpush.msra.mxu1 %v361_v26  ;;  %899 = vset.pattern.permute.xlu2 %v937_v24 }
  0x1c   : > { %458 = vmatpush.msrb.mxu0 %v365_v17 }
  0x1d   : > { %368 = vmatpush.msra.mxu1 %v367_v29 }
  0x1e   : > { %370 = vmatmul.f32.vlgmr.msra.gmra.mxu1 %v324_v20 }
  0x1f   : > { %477 = vmatpush.msrb.mxu1 %v316_v3 }
  0x21   : > { %479 = vmatpush.msrb.mxu1 %v318_v4  ;;  %460 = vmatmul.f32.vlgmr.msrb.gmra.mxu0 %v324_v20 }
  0x23   : > { %481 = vmatpush.msrb.mxu1 %v320_v5 }
  0x25   : > { %483 = vmatpush.msrb.mxu1 %v322_v7 }
  0x26   : > { %485 = vmatmul.f32.vlgmr.msrb.gmra.mxu1 %v324_v20 }
  0x88   : > { %v543_v8 = vpop.xlane.xlu1 %542 }
  0x89   : > { %vm563_vm5 = vcmp.eq.f32.partialorder %v543_v8, inf  ;;  %v566_v28 = vand.u32 2147483648, %v543_v8  ;;  %vm565_vm6 = vcmp.eq.f32.partialorder %v543_v8, 0.0 }
  0x96   : > { %v330_v37 = vpop.f32.mrf.mxu0 }
  0x97   : > { %v331_v38 = vadd.f32 %v330_v37, %v299_v36 }
  0x9a   : > { %v428_v42 = vpop.f32.mrf.mxu3 }
  0x9b   : > { %v371_v39 = vpop.f32.mrf.mxu1  ;;  %v401_v40 = vpop.f32.mrf.mxu2 }
  0x9c   : > { %v372_v41 = vadd.f32 %v371_v39, %v331_v38 }
  0x9e   : > { %v402_v43 = vadd.f32 %v401_v40, %v372_v41  ;;  %v461_v45 = vpop.f32.mrf.mxu0 }
  0xa0   : > { %v429_v44 = vadd.f32 %v428_v42, %v402_v43 }
  0xa2   : > { %v462_v46 = vadd.f32 %v461_v45, %v429_v44 }
  0xa3   : > { %v486_v47 = vpop.f32.mrf.mxu1 }
  0xa4   : > { %v1016_v49 = vadd.f32 %v486_v47, %v462_v46 }
  0xa6   : > { %v490_v50 = vmul.f32 1.442695, %v1016_v49  ;;  %v523_v51 = vadd.f32 1e-16, %v1016_v49  ;;  %vm489_vm4 = vcmp.gt.f32.partialorder %v1016_v49, 20.0 }
  0xa7   : > { %v878_v18 = vmul.f32 -1.442695, %v1016_v49 }
  0xa8   : > { %906 = vpow2.f32 %v490_v50  ;;  %v568_v53 = vmul.f32 %v523_v51, %v523_v51  ;;  %v526_v54 = vperm.slane %v523_v51, 0 }
  0xaa   : > { %v570_v55 = vsel %vm569_vm2, %v568_v53, 0.0  ;;  %v528_v56 = vmul.f32 %v526_v54, %v525_v32  ;;  %v527_v57 = vmul.f32 %v526_v54, %v524_v52 }
  0xab   : > { %571 = vadd.xlane.f32.xlu0 %v570_v55 }
  0xac   : > { %v533_v58 = vsel %vm529_vm1, %v528_v56, 0.0  ;;  %v530_v59 = vsel %vm529_vm1, %v527_v57, 0.0 }
  0xad   : > { %534 = vadd.xlane.f32.xlu2 %v533_v58  ;;  %531 = vadd.xlane.f32.xlu1 %v530_v59 }
  0xae   : > { %v907_v61 = vpop.eup %906 }
  0xaf   : > { %v492_v63 = vadd.f32 1.0, %v907_v61  ;;  %v495_v0 = vmul.f32 -0.5, %v907_v61  ;;  %v498_v3 = vand.u32 2147483647, %v907_v61 }
  0xb1   : > { %908 = vlog2.f32 %v492_v63  ;;  %v496_v2 = vadd.f32 1.0, %v495_v0  ;;  %vm499_vm3 = vcmp.lt.f32.partialorder %v498_v3, 0.0004427343 }
  0xb2   : > { %910 = vrsqrt.f32 %v543_v8 }
  0xb3   : > { %539 = vadd.xlane.f32.xlu0 %v538_v62  ;;  %v497_v5 = vmul.f32 %v907_v61, %v496_v2 }
  0xb7   : > { %v909_v1 = vpop.eup %908 }
  0xb8   : > { %v494_v4 = vmul.f32 0.6931472, %v909_v1  ;;  %v911_v9 = vpop.eup %910 }
  0xb9   : > { %v557_v10 = vmul.f32 %v911_v9, %v543_v8 }
  0xba   : > { %v500_v6 = vsel %vm499_vm3, %v497_v5, %v494_v4 }
  0xbb   : > { %v501_v7 = vsel %vm489_vm4, %v1016_v49, %v500_v6  ;;  %v558_v11 = vmul.f32 %v911_v9, %v557_v10 }
  0xbd   : > { %v559_v13 = vmul.f32 0.5, %v558_v11 }
  0xbf   : > { %v560_v14 = vsub.f32 1.5, %v559_v13 }
  0xc1   : > { %v561_v19 = vmul.f32 %v911_v9, %v560_v14 }
  0xc3   : > { %v562_v22 = vmul.f32 %v561_v19, %v543_v8 }
  0xc5   : > { %v564_v29 = vsel %vm563_vm5, %v543_v8, %v562_v22 }
  0xc6   : > { %625 = vperm.xlu1 %901, %v501_v7   ;;  %v567_v37 = vsel %vm565_vm6, %v566_v28, %v564_v29 }
  0xc7   : > { %v586_v42 = vmax.f32 %v567_v37, 1e-08 }
 0x11e   : > { %v572_v12 = vpop.xlane.xlu0 %571 }
 0x11f   : > { %912 = vrsqrt.f32 %v572_v12  ;;  %vm580_vm7 = vcmp.eq.f32.partialorder %v572_v12, inf  ;;  %v583_v33 = vand.u32 2147483648, %v572_v12  ;;  %vm582_vm8 = vcmp.eq.f32.partialorder %v572_v12, 0.0 }
 0x120   : > { %v535_v5 = vpop.xlane.xlu2 %534 }
 0x125   : > { %v913_v15 = vpop.eup %912 }
 0x126   : > { %v574_v16 = vmul.f32 %v913_v15, %v572_v12  ;;  %v540_v17 = vpop.xlane.xlu0 %539 }
 0x127   : > { %914 = vrsqrt.f32 %v540_v17  ;;  %vm551_vm9 = vcmp.eq.f32.partialorder %v540_v17, inf  ;;  %v554_v47 = vand.u32 2147483648, %v540_v17  ;;  %vm553_vm10 = vcmp.eq.f32.partialorder %v540_v17, 0.0 }
 0x128   : > { %v575_v20 = vmul.f32 %v913_v15, %v574_v16  ;;  %916 = vpow2.f32 %v878_v18  ;;  %v532_v18 = vpop.xlane.xlu1 %531 }
 0x12a   : > { %v576_v21 = vmul.f32 0.5, %v575_v20 }
 0x12c   : > { %v577_v23 = vsub.f32 1.5, %v576_v21 }
 0x12d   : > { %v915_v25 = vpop.eup %914 }
 0x12e   : > { %v578_v26 = vmul.f32 %v913_v15, %v577_v23  ;;  %v545_v27 = vmul.f32 %v915_v25, %v540_v17  ;;  %v917_v34 = vpop.eup %916  ;;  %v938_v23 = vmov 17  }
 0x12f   : > { %v505_v41 = vadd.f32 1.0, %v917_v34 }
 0x130   : > { %v579_v30 = vmul.f32 %v578_v26, %v572_v12  ;;  %v546_v32 = vmul.f32 %v915_v25, %v545_v27  ;;  %v636_v26 = vlaneseq }
 0x131   : > { %918 = vrcp.f32 %v505_v41  ;;  %v517_v15 = vand.u32 2147483648, %v505_v41  ;;  %vm511_vm6 = vweird.f32 %v505_v41 }
 0x132   : > { %v581_v35 = vsel %vm580_vm7, %v572_v12, %v579_v30  ;;  %v547_v36 = vmul.f32 0.5, %v546_v32  ;;  %v637_v27 = vand.u32 127, %v636_v26 }
 0x133   : > { %v584_v38 = vsel %vm582_vm8, %v583_v33, %v581_v35  ;;  %v518_v22 = vor.u32 1.1754944e-38, %v517_v15 }
 0x134   : > { %v587_v39 = vmax.f32 %v584_v38, 1e-08  ;;  %v548_v40 = vsub.f32 1.5, %v547_v36  ;;  %v639_v28 = vadd.s32 4294967288, %v637_v27 }
 0x136   : > { %v589_v43 = vperm.slane %v587_v39, 0  ;;  %v549_v44 = vmul.f32 %v915_v25, %v548_v40 }
 0x137   : > { %v919_v53 = vpop.eup %918 }
 0x138   : > { %v592_v45 = vmul.f32 %v589_v43, %v586_v42  ;;  %v550_v46 = vmul.f32 %v549_v44, %v540_v17  ;;  %v507_v57 = vmul.f32 %v919_v53, %v505_v41  ;;  %vm512_vm3 = vweird.f32 %v919_v53  ;;  %v626_v34 = vpop.permute.xlu1 %625 }
 0x139   : > { %vm513_vm7 = vmor %vm511_vm6, %vm512_vm3 }
 0x13a   : > { %920 = vrcp.f32 %v592_v45  ;;  %v552_v50 = vsel %vm551_vm9, %v540_v17, %v550_v46  ;;  %v619_v59 = vand.u32 2147483648, %v592_v45  ;;  %v617_v61 = vand.u32 2147483647, %v592_v45 }
 0x13b   : > { %v555_v51 = vsel %vm553_vm10, %v554_v47, %v552_v50  ;;  %v508_v62 = vsub.f32 1.0, %v507_v57  ;;  %vm613_vm12 = vweird.f32 %v592_v45  ;;  %v515_v17 = vand.u32 2147483647, %v505_v41  ;;  %v669_v50 = vld [vmem:[%s284_s19] sm:$0x7] }
 0x13c   : > { %v585_v52 = vmax.f32 %v555_v51, 1e-08  ;;  %v620_v1 = vor.u32 1.1754944e-38, %v619_v59  ;;  %vm618_vm14 = vcmp.eq.f32.partialorder %v617_v61, 8.507059e+37  ;;  %vm641_vm9 = vcmask 130112  }
 0x13d   : > { %v509_v7 = vmul.f32 %v919_v53, %v508_v62  ;;  %vm516_vm8 = vcmp.eq.f32.partialorder %v515_v17, 8.507059e+37  ;;  %v689_v59 = vmul.f32 0.95, %v669_v50 }
 0x13e   : > { %v591_v54 = vmul.f32 %v589_v43, %v585_v52  ;;  %v685_v52 = vrot.slane %v669_v50, 2 }
 0x13f   : > { %v510_v13 = vadd.f32 %v919_v53, %v509_v7  ;;  %v939_v7 = vmov 0.0  }
 0x140   : > { %v921_v55 = vpop.eup %920  ;;  %922 = vrcp.f32 %v591_v54  ;;  %v604_v9 = vand.u32 2147483648, %v591_v54  ;;  %v602_v11 = vand.u32 2147483647, %v591_v54  ;;  %vm598_vm0 = vweird.f32 %v591_v54 }
 0x141   : > { %v609_v56 = vmul.f32 %v921_v55, %v592_v45  ;;  %vm614_vm11 = vweird.f32 %v921_v55  ;;  %v514_v21 = vsel %vm513_vm7, %v919_v53, %v510_v13 }
 0x142   : > { %vm615_vm13 = vmor %vm613_vm12, %vm614_vm11  ;;  %v605_v14 = vor.u32 1.1754944e-38, %v604_v9  ;;  %vm603_vm5 = vcmp.eq.f32.partialorder %v602_v11, 8.507059e+37  ;;  %v519_v24 = vsel %vm516_vm8, %v518_v22, %v514_v21 }
 0x143   : > { %v610_v58 = vsub.f32 1.0, %v609_v56  ;;  %v679_v25 = vsub.f32 1.0, %v519_v24  ;;  %v676_v56 = vrot.slane %v669_v50, 1 }
 0x145   : > { %v611_v60 = vmul.f32 %v921_v55, %v610_v58 }
 0x146   : > { %v923_v63 = vpop.eup %922 }
 0x147   : > { %v612_v0 = vadd.f32 %v921_v55, %v611_v60  ;;  %v594_v2 = vmul.f32 %v923_v63, %v591_v54  ;;  %vm599_vm15 = vweird.f32 %v923_v63 }
 0x148   : > { %vm600_vm4 = vmor %vm598_vm0, %vm599_vm15 }
 0x149   : > { %v616_v3 = vsel %vm615_vm13, %v921_v55, %v612_v0  ;;  %v595_v6 = vsub.f32 1.0, %v594_v2 }
 0x14a   : > { %v621_v4 = vsel %vm618_vm14, %v620_v1, %v616_v3 }
 0x14b   : > { %v622_v8 = vmul.f32 %v621_v4, %v535_v5  ;;  %v596_v10 = vmul.f32 %v923_v63, %v595_v6 }
 0x14d   : > { %634 = vperm.xlu0 %900, %v622_v8   ;;  %v597_v12 = vadd.f32 %v923_v63, %v596_v10 }
 0x14f   : > { %v601_v16 = vsel %vm600_vm4, %v923_v63, %v597_v12 }
 0x150   : > { %v606_v19 = vsel %vm603_vm5, %v605_v14, %v601_v16 }
 0x151   : > { %v607_v20 = vmul.f32 %v606_v19, %v532_v18  ;;  %v739_v18 = vshrl.u32 %v636_v26, 7 }
 0x153   : > { %631 = vperm.xlu2 %899, %v607_v20   ;;  %v746_v19 = vadd.s32 8, %v739_v18  ;;  %903 = vset.pattern.permute.xlu1 %v739_v18 }
 0x155   : > { %902 = vset.pattern.permute.xlu0 %v938_v23 }
 0x156   : > { %672 = vperm.xlu0 %902, %v519_v24  }
 0x15b   : > { %904 = vset.pattern.permute.xlu2 %v746_v19 }
 0x15e   : > { %682 = vperm.xlu0 %902, %v679_v25  }
 0x166   : > { %905 = vset.pattern.permute.xlu0 %v746_v19 }
 0x1ad   : > { %v632_v29 = vpop.permute.xlu2 %631 }
 0x1ae   : > { %v638_v32 = vperm.slane %v632_v29, %v637_v27 }
 0x1bf   : > { %v635_v30 = vpop.permute.xlu0 %634 }
 0x1c0   : > { %v640_v33 = vperm.slane %v635_v30, %v639_v28 }
 0x1c2   : > { %v642_v35 = vsel %vm641_vm9, %v640_v33, %v638_v32  ;;  %v750_v33 = vperm.slane %v1016_v49, 0 }
 0x1c3   : > { %v644_v36 = vmul.f32 %v642_v35, %v626_v34 }
 0x1c5   : > { %v645_v37 = vsel %vm569_vm2, %v644_v36, -inf }
 0x1c6   : > { %646 = vmax.xlane.f32.xlu2 %v645_v37 }
 0x1c8   : > { %v673_v44 = vpop.permute.xlu0 %672 }
 0x1c9   : > { %v678_v63 = vmul.f32 %v676_v56, %v673_v44 }
 0x1d0   : > { %v683_v55 = vpop.permute.xlu0 %682 }
 0x1d1   : > { %v687_v60 = vmul.f32 %v685_v52, %v683_v55 }
 0x1d3   : > { %v688_v1 = vadd.f32 %v687_v60, %v678_v63 }
 0x1d5   : > { %v737_v26 = vperm.slane %v688_v1, 0 }
 0x239   : > { %v647_v38 = vpop.xlane.xlu2 %646 }
 0x23a   : > { %v648_v39 = vsub.f32 %v644_v36, %v647_v38 }
 0x23c   : > { %v649_v40 = vmul.f32 1.442695, %v648_v39 }
 0x23e   : > { %924 = vpow2.f32 %v649_v40 }
 0x244   : > { %v925_v41 = vpop.eup %924 }
 0x245   : > { %v651_v42 = vsel %vm569_vm2, %v925_v41, 0.0 }
 0x246   : > { %652 = vadd.xlane.f32.xlu1 %v651_v42 }
 0x2b9   : > { %v653_v43 = vpop.xlane.xlu1 %652 }
 0x2ba   : > { %926 = vrcp.f32 %v653_v43  ;;  %v665_v51 = vand.u32 2147483648, %v653_v43  ;;  %v663_v54 = vand.u32 2147483647, %v653_v43  ;;  %vm659_vm11 = vweird.f32 %v653_v43 }
 0x2bc   : > { %v666_v58 = vor.u32 1.1754944e-38, %v665_v51  ;;  %vm664_vm13 = vcmp.eq.f32.partialorder %v663_v54, 8.507059e+37 }
 0x2c0   : > { %v927_v45 = vpop.eup %926 }
 0x2c1   : > { %v655_v46 = vmul.f32 %v927_v45, %v653_v43  ;;  %vm660_vm10 = vweird.f32 %v927_v45 }
 0x2c2   : > { %vm661_vm12 = vmor %vm659_vm11, %vm660_vm10 }
 0x2c3   : > { %v656_v47 = vsub.f32 1.0, %v655_v46 }
 0x2c5   : > { %v657_v53 = vmul.f32 %v927_v45, %v656_v47 }
 0x2c7   : > { %v658_v57 = vadd.f32 %v927_v45, %v657_v53 }
 0x2c9   : > { %v662_v61 = vsel %vm661_vm12, %v927_v45, %v658_v57 }
 0x2ca   : > { %v667_v62 = vsel %vm664_vm13, %v666_v58, %v662_v61 }
 0x2cb   : > { %v668_v0 = vmul.f32 %v925_v41, %v667_v62 }
 0x2cd   : > { %v690_v2 = vadd.f32 %v689_v59, %v668_v0  ;;  %758 = vst.msk [vmem:[%s1038_s24 + $0x1] sm:$0x1] %vm569_vm2, %v668_v0 }
 0x2cf   : > { %v691_v3 = vadd.f32 %v690_v2, %v688_v1 }
 0x2d1   : > { %757 = vst.msk [vmem:[%s1038_s24] sm:$0x1] %vm569_vm2, %v691_v3  ;;  %v692_v4 = vsel %vm569_vm2, %v691_v3, inf }
 0x2d2   : > { %693 = vmin.xlane.f32.xlu2 %v692_v4 }
 0x345   : > { %v694_v5 = vpop.xlane.xlu2 %693 }
 0x346   : > { %vm702_vm14 = vcmp.gt.f32.partialorder %v691_v3, %v694_v5  ;;  %vm695_vm15 = vcmp.le.f32.partialorder %v691_v3, %v694_v5 }
 0x347   : > { %v703_v6 = vsel %vm702_vm14, %v691_v3, 3e+38  ;;  %v879_v8 = vsel %vm695_vm15, 1.0, %v939_v7 }
 0x348   : > { %v704_v9 = vsel %vm569_vm2, %v703_v6, inf  ;;  %v698_v10 = vsel %vm569_vm2, %v879_v8, 0.0 }
 0x349   : > { %705 = vmin.xlane.f32.xlu2 %v704_v9  ;;  %699 = vadd.xlane.f32.xlu0 %v698_v10 }
 0x3bc   : > { %v706_v11 = vpop.xlane.xlu2 %705  ;;  %v700_v12 = vpop.xlane.xlu0 %699 }
 0x3bd   : > { %vm701_vm0 = vcmp.ge.f32.partialorder %v700_v12, 4.0 }
 0x3be   : > { %v707_v13 = vsel %vm701_vm0, %v694_v5, %v706_v11 }
 0x3bf   : > { %vm715_vm3 = vcmp.gt.f32.partialorder %v691_v3, %v707_v13  ;;  %vm708_vm4 = vcmp.le.f32.partialorder %v691_v3, %v707_v13 }
 0x3c0   : > { %v716_v14 = vsel %vm715_vm3, %v691_v3, 3e+38  ;;  %v880_v15 = vsel %vm708_vm4, 1.0, %v939_v7 }
 0x3c1   : > { %v717_v16 = vsel %vm569_vm2, %v716_v14, inf  ;;  %v711_v17 = vsel %vm569_vm2, %v880_v15, 0.0 }
 0x3c2   : > { %718 = vmin.xlane.f32.xlu2 %v717_v16  ;;  %712 = vadd.xlane.f32.xlu1 %v711_v17 }
 0x435   : > { %v719_v20 = vpop.xlane.xlu2 %718  ;;  %v713_v21 = vpop.xlane.xlu1 %712 }
 0x436   : > { %vm714_vm5 = vcmp.ge.f32.partialorder %v713_v21, 4.0 }
 0x437   : > { %v720_v22 = vsel %vm714_vm5, %v707_v13, %v719_v20 }
 0x438   : > { %vm728_vm6 = vcmp.gt.f32.partialorder %v691_v3, %v720_v22  ;;  %vm721_vm7 = vcmp.le.f32.partialorder %v691_v3, %v720_v22 }
 0x439   : > { %v729_v23 = vsel %vm728_vm6, %v691_v3, 3e+38  ;;  %v881_v24 = vsel %vm721_vm7, 1.0, %v939_v7 }
 0x43a   : > { %v730_v25 = vsel %vm569_vm2, %v729_v23, inf  ;;  %v724_v27 = vsel %vm569_vm2, %v881_v24, 0.0 }
 0x43b   : > { %731 = vmin.xlane.f32.xlu2 %v730_v25  ;;  %725 = vadd.xlane.f32.xlu1 %v724_v27 }
 0x453   : > { %748 = vperm.xlu2 %904, %v737_v26  }
 0x454   : > { %742 = vperm.xlu1 %903, %v737_v26  }
 0x4ae   : > { %v732_v28 = vpop.xlane.xlu2 %731  ;;  %v726_v29 = vpop.xlane.xlu1 %725 }
 0x4af   : > { %vm727_vm8 = vcmp.ge.f32.partialorder %v726_v29, 4.0 }
 0x4b0   : > { %v733_v30 = vsel %vm727_vm8, %v720_v22, %v732_v28 }
 0x4b1   : > { %vm734_vm9 = vcmp.le.f32.partialorder %v691_v3, %v733_v30 }
 0x4b2   : > { %v882_v32 = vsel %vm734_vm9, 1.0, %v939_v7 }
 0x4b3   : > { %759 = vst.msk [vmem:[%s1038_s24 + $0x2] sm:$0x1] %vm569_vm2, %v882_v32 }
 0x4b6   : > { %v749_v34 = vpop.permute.xlu2 %748 }
 0x4b7   : > { %v752_v35 = vmul.f32 %v750_v33, %v749_v34 }
 0x4b9   : > { %v754_v36 = vadd.f32 %v752_v35, %v1007_v31 }
 0x4bb   : > { %756 = vst.msk [vmem:[%s293_s27 + $0x8] sm:$0xff] %vm529_vm1, %v754_v36 }
 0x4c6   : > { %v743_v37 = vpop.permute.xlu1 %742 }
 0x4c7   : > { %v751_v38 = vmul.f32 %v750_v33, %v743_v37 }
 0x4c9   : > { %v753_v39 = vadd.f32 %v751_v38, %v1014_v48 }
 0x4cb   : > { %755 = vst.msk [vmem:[%s293_s27] sm:$0xff] %vm529_vm1, %v753_v39 }
 0x4cc PF: > { %s17_s21 = sadd.s32 1, %s934_s21  }
 0x4cd   : > { %p14_p4 = scmp.ge.s32.totalorder %s17_s21, 4  }
 0x4cf   :  { %16 = sbr.rel (!%p14_p4) target bundleno = 1 (0x1), region = 88 }

</bundles_post_ra>
